<compile_context>
chip_gen: v6e
topology: v6e:2x2x1
jax: 0.10.0
libtpu: 0.0.40
codegen_flags: <defaults>
</compile_context>

<pallas_src>
import functools

import jax
import jax.numpy as jnp
from jax.experimental import pallas as pl
from jax.experimental.pallas import tpu as pltpu

_VMEM_LIMIT_BYTES = 32 * 1024 * 1024  # safe on v5e(128MiB)/v6e(128)/v7x(64) physical VMEM


# -----------------------------------------------------------------------------
# Kernels
# -----------------------------------------------------------------------------
def _conv_rows(w_ref, x_ref, n_rows):
    """rows[j][0, l] = sum_c x[0, c, l] * w_flat[c * n_rows + j]   (j = o*K + k).

    C_in * n_rows (= 6) scalar*vector FMAs on the VPU; the length dim stays on
    the lane axis the whole time (no MXU, no transposes).
    """
    c_in = x_ref.shape[1]
    xt = x_ref[0]                          # (C_in, L_tile): one dense load
    rows = []
    for j in range(n_rows):
        acc = xt[0:1, :] * w_ref[j]
        for c in range(1, c_in):
            acc = acc + xt[c:c + 1, :] * w_ref[c * n_rows + j]
        rows.append(acc)                   # (1, L_tile)
    return rows


def _decoder_kernel_fused(w_ref, x_ref, o_ref):
    """Fused variant: o_ref is (1, C_out, K*L_tile), already interleaved.

    out[0, o, l*K + k] = rows[o*K + k][0, l]
    """
    lt = x_ref.shape[2]
    c_out = o_ref.shape[1]
    k_sz = o_ref.shape[2] // lt
    rows = _conv_rows(w_ref, x_ref, c_out * k_sz)
    for o in range(c_out):
        # Lane interleave: stack -> (1, L_tile, K), row-major flatten -> element
        # l*K + k comes from rows[o*K + k][0, l].  Rides idle VPU/XLU slots and
        # hides under the HBM DMA.
        slab = jnp.stack(rows[o * k_sz:(o + 1) * k_sz], axis=-1)  # (1, L_tile, K)
        o_ref[0, o:o + 1, :] = slab.reshape(1, k_sz * lt)


def _decoder_kernel_rows(w_ref, x_ref, o_ref):
    """Fallback variant: o_ref is (1, C_out*K, L_tile); row j = o*K + k.

    The interleave is then done by one XLA transpose pass in the wrapper
    (previous, known-good layout).
    """
    n_rows = o_ref.shape[1]
    rows = _conv_rows(w_ref, x_ref, n_rows)
    o_ref[0] = jnp.concatenate(rows, axis=0)      # single (C_out*K, L_tile) slab store


# -----------------------------------------------------------------------------
# pallas_call builder + tiling policy
# -----------------------------------------------------------------------------
def _choose_length_tile(l_work, n_batch):
    """Largest length tile (multiple of 128, VMEM-capped) dividing l_work.

    Prefers a choice that leaves >=2 grid blocks in total so both v7x
    TensorCores get work.  Returns None if no candidate divides l_work.
    """
    best = None
    for t in (65536, 32768, 16384, 8192, 4096, 2048, 1024, 512, 256, 128):
        if l_work % t == 0:
            if best is None:
                best = t
            if n_batch >= 2 or l_work // t >= 2:
                return t
    return best


def _build_call(n_blk, c_in, c_out, k_sz, l_work, l_tile, dtype, fused):
    grid = (n_blk, l_work // l_tile)
    # Tiny weight table lives in 1-D SMEM (no (8,128) padding), read as scalars.
    w_spec = pl.BlockSpec((c_in * c_out * k_sz,), lambda n, l: (0,),
                          memory_space=pltpu.MemorySpace.SMEM)
    # NCL input kept end-to-end; the length dim is tiled on the lane axis.
    # (If profiling on v7x still shows exposed input DMA, add
    #  pipeline_mode=pl.Buffered(3) here.)
    x_spec = pl.BlockSpec((1, c_in, l_tile), lambda n, l: (n, 0, l))

    if fused:
        kernel = _decoder_kernel_fused
        out_shape = jax.ShapeDtypeStruct((n_blk, c_out, k_sz * l_work), dtype)
        out_spec = pl.BlockSpec((1, c_out, k_sz * l_tile), lambda n, l: (n, 0, l))
    else:
        kernel = _decoder_kernel_rows
        out_shape = jax.ShapeDtypeStruct((n_blk, c_out * k_sz, l_work), dtype)
        out_spec = pl.BlockSpec((1, c_out * k_sz, l_tile), lambda n, l: (n, 0, l))

    flops = 2 * n_blk * l_work * c_in * c_out * k_sz
    bytes_accessed = 4 * (n_blk * c_in * l_work + n_blk * c_out * k_sz * l_work
                          + c_in * c_out * k_sz)
    return pl.pallas_call(
        kernel,
        out_shape=out_shape,
        grid=grid,
        in_specs=[w_spec, x_spec],
        out_specs=out_spec,
        compiler_params=pltpu.CompilerParams(
            dimension_semantics=("parallel", "parallel"),
            vmem_limit_bytes=_VMEM_LIMIT_BYTES),
        cost_estimate=pl.CostEstimate(
            flops=flops, transcendentals=0, bytes_accessed=bytes_accessed),
    )


@functools.lru_cache(maxsize=None)
def _interleave_fusion_supported(c_in, c_out, k_sz, l_tile, dtype_name):
    """Probe once per tile config whether Mosaic lowers (and computes correctly)
    the in-kernel lane interleave; otherwise we fall back to the two-pass path."""
    dtype = jnp.dtype(dtype_name)
    try:
        call = _build_call(1, c_in, c_out, k_sz, l_tile, l_tile, dtype, fused=True)
        x = (jnp.arange(c_in * l_tile, dtype=jnp.float32) % 5.0 - 2.0)
        x = x.reshape(1, c_in, l_tile).astype(dtype)
        wf = (jnp.arange(c_in * c_out * k_sz, dtype=jnp.float32) + 1.0).astype(dtype)
        y = jax.block_until_ready(call(wf, x))
        ref = jnp.einsum("ncl,cok->nolk", x, wf.reshape(c_in, c_out, k_sz))
        ref = ref.reshape(1, c_out, k_sz * l_tile)
        return bool(jnp.allclose(y, ref, atol=1e-4, rtol=1e-4))
    except Exception:
        return False


# -----------------------------------------------------------------------------
# Forward wrapper (== Decoder.forward)
# -----------------------------------------------------------------------------
def decoder_forward(x, w):
    """ConvTranspose1d forward, bias=False, padding=0, stride == kernel_size.

    x: (N, C_in, L)      float32, NCL layout (same as PyTorch)
    w: (C_in, C_out, K)  float32 (PyTorch ConvTranspose1d weight layout)
    returns: (N, C_out, (L-1)*stride + K) == (N, C_out, L*K) since stride == K
    """
    N, C_in, L = x.shape
    C_in_w, C_out, K = w.shape
    assert C_in == C_in_w
    stride = K                      # Decoder uses stride == kernel_size (=2)
    L_out = (L - 1) * stride + K    # == L * K

    w_flat = w.reshape(C_in * C_out * K)   # free reshape; 1-D avoids SMEM padding

    # ---- choose a lane-dense length tile (pad irregular L to a mult. of 128) --
    if L % 128 == 0 or L < 128:
        L_work, x_work = L, x
    else:
        L_work = ((L + 127) // 128) * 128
        # zero columns only add zero outputs at the tail, which are sliced off
        x_work = jnp.pad(x, ((0, 0), (0, 0), (0, L_work - L)))
    L_tile = _choose_length_tile(L_work, N) or L_work

    fused = _interleave_fusion_supported(C_in, C_out, K, L_tile, jnp.dtype(x.dtype).name)
    call = _build_call(N, C_in, C_out, K, L_work, L_tile, x.dtype, fused)
    y = call(w_flat, x_work)

    if fused:
        out = y                                                  # already interleaved
    else:
        # y[n, o*K + k, l] -> out[n, o, l*K + k]  (single XLA pass over the output)
        out = jnp.transpose(y.reshape(N, C_out, K, L_work), (0, 1, 3, 2))
        out = out.reshape(N, C_out, K * L_work)
    return out[:, :, :L_out]


if __name__ == "__main__":
    key = jax.random.PRNGKey(0)
    kx, kw = jax.random.split(key)

    # Shapes consistent with the module: in_features=3, out_features=1,
    # kernel_size=2, stride=2.  batch=2, length=16.
    N, C_in, L = 2, 3, 16
    C_out, K = 1, 2

    x = jax.random.normal(kx, (N, C_in, L), dtype=jnp.float32)
    w = jax.random.normal(kw, (C_in, C_out, K), dtype=jnp.float32) * 0.1

    out = jax.block_until_ready(decoder_forward(x, w))

    # Pure-JAX reference for ConvTranspose1d (stride=2, k=2 -> non-overlapping).
    ref = jnp.einsum("ncl,cok->nolk", x, w).reshape(N, C_out, L * K)

    assert out.shape == (N, C_out, (L - 1) * 2 + K)
    assert jnp.allclose(out, ref, atol=1e-5, rtol=1e-5)

    # TODO(synk): self.bn (BatchNorm1d) exists on the module but is not used in
    # forward(), so it is intentionally not implemented here.
    print("KERNEL_OK")
</pallas_src>

<mosaic_0001>
module attributes {stable_mosaic.version = 11 : i64} {
  func.func @_decoder_kernel_fused(%arg0: i32, %arg1: i32, %arg2: memref<6xf32, #tpu.memory_space<smem>>, %arg3: memref<1x3x16xf32, #tpu.memory_space<vmem>>, %arg4: memref<1x1x32xf32, #tpu.memory_space<vmem>>) attributes {dimension_semantics = [#tpu.dimension_semantics<parallel>, #tpu.dimension_semantics<parallel>], iteration_bounds = array<i64: 1, 1>, scalar_prefetch = 0 : i64, scratch_operands = 0 : i64, tpu.core_type = #tpu.core_type<tc>, window_params = [{transform_indices = @transform_0, window_bounds = array<i64: 6>}, {transform_indices = @transform_1, window_bounds = array<i64: 1, 3, 16>}, {transform_indices = @transform_2, window_bounds = array<i64: 1, 1, 32>}]} {
    %c0 = arith.constant 0 : index
    %c0_0 = arith.constant 0 : index
    %c0_1 = arith.constant 0 : index
    %0 = vector.load %arg3[%c0, %c0_0, %c0_1] : memref<1x3x16xf32, #tpu.memory_space<vmem>>, vector<1x3x16xf32>
    %1 = vector.shape_cast %0 : vector<1x3x16xf32> to vector<3x16xf32>
    %2 = vector.extract_strided_slice %1 {offsets = [0, 0], sizes = [1, 16], strides = [1, 1]} : vector<3x16xf32> to vector<1x16xf32>
    %c0_2 = arith.constant 0 : index
    %3 = memref.load %arg2[%c0_2] : memref<6xf32, #tpu.memory_space<smem>>
    %4 = vector.broadcast %3 : f32 to vector<1x16xf32>
    %5 = arith.mulf %2, %4 : vector<1x16xf32>
    %6 = vector.extract_strided_slice %1 {offsets = [1, 0], sizes = [1, 16], strides = [1, 1]} : vector<3x16xf32> to vector<1x16xf32>
    %c2 = arith.constant 2 : index
    %7 = memref.load %arg2[%c2] : memref<6xf32, #tpu.memory_space<smem>>
    %8 = vector.broadcast %7 : f32 to vector<1x16xf32>
    %9 = arith.mulf %6, %8 : vector<1x16xf32>
    %10 = arith.addf %5, %9 : vector<1x16xf32>
    %11 = vector.extract_strided_slice %1 {offsets = [2, 0], sizes = [1, 16], strides = [1, 1]} : vector<3x16xf32> to vector<1x16xf32>
    %c4 = arith.constant 4 : index
    %12 = memref.load %arg2[%c4] : memref<6xf32, #tpu.memory_space<smem>>
    %13 = vector.broadcast %12 : f32 to vector<1x16xf32>
    %14 = arith.mulf %11, %13 : vector<1x16xf32>
    %15 = arith.addf %10, %14 : vector<1x16xf32>
    %16 = vector.extract_strided_slice %1 {offsets = [0, 0], sizes = [1, 16], strides = [1, 1]} : vector<3x16xf32> to vector<1x16xf32>
    %c1 = arith.constant 1 : index
    %17 = memref.load %arg2[%c1] : memref<6xf32, #tpu.memory_space<smem>>
    %18 = vector.broadcast %17 : f32 to vector<1x16xf32>
    %19 = arith.mulf %16, %18 : vector<1x16xf32>
    %20 = vector.extract_strided_slice %1 {offsets = [1, 0], sizes = [1, 16], strides = [1, 1]} : vector<3x16xf32> to vector<1x16xf32>
    %c3 = arith.constant 3 : index
    %21 = memref.load %arg2[%c3] : memref<6xf32, #tpu.memory_space<smem>>
    %22 = vector.broadcast %21 : f32 to vector<1x16xf32>
    %23 = arith.mulf %20, %22 : vector<1x16xf32>
    %24 = arith.addf %19, %23 : vector<1x16xf32>
    %25 = vector.extract_strided_slice %1 {offsets = [2, 0], sizes = [1, 16], strides = [1, 1]} : vector<3x16xf32> to vector<1x16xf32>
    %c5 = arith.constant 5 : index
    %26 = memref.load %arg2[%c5] : memref<6xf32, #tpu.memory_space<smem>>
    %27 = vector.broadcast %26 : f32 to vector<1x16xf32>
    %28 = arith.mulf %25, %27 : vector<1x16xf32>
    %29 = arith.addf %24, %28 : vector<1x16xf32>
    %30 = vector.shape_cast %15 : vector<1x16xf32> to vector<1x16x1xf32>
    %31 = vector.shape_cast %29 : vector<1x16xf32> to vector<1x16x1xf32>
    %32 = tpu.concatenate %30, %31 in 2 : vector<1x16x1xf32>, vector<1x16x1xf32> -> vector<1x16x2xf32>
    %33 = vector.shape_cast %32 : vector<1x16x2xf32> to vector<1x32xf32>
    %c0_3 = arith.constant 0 : index
    %c0_4 = arith.constant 0 : index
    %c0_5 = arith.constant 0 : index
    %34 = vector.load %arg4[%c0_3, %c0_4, %c0_5] : memref<1x1x32xf32, #tpu.memory_space<vmem>>, vector<1x1x32xf32>
    %35 = vector.shape_cast %34 : vector<1x1x32xf32> to vector<1x32xf32>
    %36 = vector.shape_cast %33 : vector<1x32xf32> to vector<1x1x32xf32>
    tpu.vector_store %arg4[%c0_3, %c0_4, %c0_5], %36 {strides = array<i32>} : memref<1x1x32xf32, #tpu.memory_space<vmem>>, vector<1x1x32xf32>,
    return
  }
  func.func @transform_0(%arg0: i32, %arg1: i32) -> i32 {
    %c0_i32 = arith.constant 0 : i32
    %c0_i32_0 = arith.constant 0 : i32
    return %c0_i32 : i32
  }
  func.func @transform_1(%arg0: i32, %arg1: i32) -> (i32, i32, i32) {
    %c0_i32 = arith.constant 0 : i32
    %c0_i32_0 = arith.constant 0 : i32
    return %arg0, %c0_i32, %arg1 : i32, i32, i32
  }
  func.func @transform_2(%arg0: i32, %arg1: i32) -> (i32, i32, i32) {
    %c0_i32 = arith.constant 0 : i32
    %c0_i32_0 = arith.constant 0 : i32
    return %arg0, %c0_i32, %arg1 : i32, i32, i32
  }
}

module attributes {stable_mosaic.version = 11 : i64} {
  func.func @_decoder_kernel_rows(%arg0: i32, %arg1: i32, %arg2: memref<6xf32, #tpu.memory_space<smem>>, %arg3: memref<1x3x16xf32, #tpu.memory_space<vmem>>, %arg4: memref<1x2x16xf32, #tpu.memory_space<vmem>>) attributes {dimension_semantics = [#tpu.dimension_semantics<parallel>, #tpu.dimension_semantics<parallel>], iteration_bounds = array<i64: 2, 1>, scalar_prefetch = 0 : i64, scratch_operands = 0 : i64, tpu.core_type = #tpu.core_type<tc>, window_params = [{transform_indices = @transform_0, window_bounds = array<i64: 6>}, {transform_indices = @transform_1, window_bounds = array<i64: 1, 3, 16>}, {transform_indices = @transform_2, window_bounds = array<i64: 1, 2, 16>}]} {
    %c0 = arith.constant 0 : index
    %c0_0 = arith.constant 0 : index
    %c0_1 = arith.constant 0 : index
    %0 = vector.load %arg3[%c0, %c0_0, %c0_1] : memref<1x3x16xf32, #tpu.memory_space<vmem>>, vector<1x3x16xf32>
    %1 = vector.shape_cast %0 : vector<1x3x16xf32> to vector<3x16xf32>
    %2 = vector.extract_strided_slice %1 {offsets = [0, 0], sizes = [1, 16], strides = [1, 1]} : vector<3x16xf32> to vector<1x16xf32>
    %c0_2 = arith.constant 0 : index
    %3 = memref.load %arg2[%c0_2] : memref<6xf32, #tpu.memory_space<smem>>
    %4 = vector.broadcast %3 : f32 to vector<1x16xf32>
    %5 = arith.mulf %2, %4 : vector<1x16xf32>
    %6 = vector.extract_strided_slice %1 {offsets = [1, 0], sizes = [1, 16], strides = [1, 1]} : vector<3x16xf32> to vector<1x16xf32>
    %c2 = arith.constant 2 : index
    %7 = memref.load %arg2[%c2] : memref<6xf32, #tpu.memory_space<smem>>
    %8 = vector.broadcast %7 : f32 to vector<1x16xf32>
    %9 = arith.mulf %6, %8 : vector<1x16xf32>
    %10 = arith.addf %5, %9 : vector<1x16xf32>
    %11 = vector.extract_strided_slice %1 {offsets = [2, 0], sizes = [1, 16], strides = [1, 1]} : vector<3x16xf32> to vector<1x16xf32>
    %c4 = arith.constant 4 : index
    %12 = memref.load %arg2[%c4] : memref<6xf32, #tpu.memory_space<smem>>
    %13 = vector.broadcast %12 : f32 to vector<1x16xf32>
    %14 = arith.mulf %11, %13 : vector<1x16xf32>
    %15 = arith.addf %10, %14 : vector<1x16xf32>
    %16 = vector.extract_strided_slice %1 {offsets = [0, 0], sizes = [1, 16], strides = [1, 1]} : vector<3x16xf32> to vector<1x16xf32>
    %c1 = arith.constant 1 : index
    %17 = memref.load %arg2[%c1] : memref<6xf32, #tpu.memory_space<smem>>
    %18 = vector.broadcast %17 : f32 to vector<1x16xf32>
    %19 = arith.mulf %16, %18 : vector<1x16xf32>
    %20 = vector.extract_strided_slice %1 {offsets = [1, 0], sizes = [1, 16], strides = [1, 1]} : vector<3x16xf32> to vector<1x16xf32>
    %c3 = arith.constant 3 : index
    %21 = memref.load %arg2[%c3] : memref<6xf32, #tpu.memory_space<smem>>
    %22 = vector.broadcast %21 : f32 to vector<1x16xf32>
    %23 = arith.mulf %20, %22 : vector<1x16xf32>
    %24 = arith.addf %19, %23 : vector<1x16xf32>
    %25 = vector.extract_strided_slice %1 {offsets = [2, 0], sizes = [1, 16], strides = [1, 1]} : vector<3x16xf32> to vector<1x16xf32>
    %c5 = arith.constant 5 : index
    %26 = memref.load %arg2[%c5] : memref<6xf32, #tpu.memory_space<smem>>
    %27 = vector.broadcast %26 : f32 to vector<1x16xf32>
    %28 = arith.mulf %25, %27 : vector<1x16xf32>
    %29 = arith.addf %24, %28 : vector<1x16xf32>
    %30 = tpu.concatenate %15, %29 in 0 : vector<1x16xf32>, vector<1x16xf32> -> vector<2x16xf32>
    %c0_3 = arith.constant 0 : index
    %c0_4 = arith.constant 0 : index
    %c0_5 = arith.constant 0 : index
    %31 = vector.load %arg4[%c0_3, %c0_4, %c0_5] : memref<1x2x16xf32, #tpu.memory_space<vmem>>, vector<1x2x16xf32>
    %32 = vector.shape_cast %31 : vector<1x2x16xf32> to vector<2x16xf32>
    %33 = vector.shape_cast %30 : vector<2x16xf32> to vector<1x2x16xf32>
    tpu.vector_store %arg4[%c0_3, %c0_4, %c0_5], %33 {strides = array<i32>} : memref<1x2x16xf32, #tpu.memory_space<vmem>>, vector<1x2x16xf32>,
    return
  }
  func.func @transform_0(%arg0: i32, %arg1: i32) -> i32 {
    %c0_i32 = arith.constant 0 : i32
    %c0_i32_0 = arith.constant 0 : i32
    return %c0_i32 : i32
  }
  func.func @transform_1(%arg0: i32, %arg1: i32) -> (i32, i32, i32) {
    %c0_i32 = arith.constant 0 : i32
    %c0_i32_0 = arith.constant 0 : i32
    return %arg0, %c0_i32, %arg1 : i32, i32, i32
  }
  func.func @transform_2(%arg0: i32, %arg1: i32) -> (i32, i32, i32) {
    %c0_i32 = arith.constant 0 : i32
    %c0_i32_0 = arith.constant 0 : i32
    return %arg0, %c0_i32, %arg1 : i32, i32, i32
  }
}

</mosaic_0001>

<bundles_post_ra>
// kernel: tpu_custom_call.1
= control target key start
LH: loop header
LB: loop body
LE: loop exit
PB: predicated region body
PF: predicated region fallthrough
CT: control target
= control target key end

     0   :  { %7 = vsyncpa [#allocation4], 0  ;;  %s395_s0 = inlined_call_operand.vmem [shape: f32[6], index: 0, kind: input, shape index: {}]   ;;  %s396_s1 = inlined_call_operand.vmem [shape: f32[1,3,16], index: 1, kind: input, shape index: {}]   ;;  %s397_s2 = inlined_call_operand.hbm [shape: f32[1,1,32], index: 2, kind: output, shape index: {}]  }
   0x1   :  { %8 = vsyncpa [#allocation3], 0  ;;  %s15_s11 = sshll.u32 %s395_s0, 4  ;;  %s16_s11 = int_to_ptr.vmem [resolvable:$true] %s15_s11 }
   0x2   :  { %s315_s12 = scalar_lea.vmem %s16_s11, 16  ;;  %p320_p1 = scmp.lt.s32.totalorder %s16_s11, %s16_s11 }
   0x3   :  { %p316_p0 = scmp.ne.s32.totalorder %s16_s11, %s315_s12  ;;  %p321_p2 = scmp.lt.s32.totalorder %s315_s12, %s315_s12 }
   0x5   :  { %p322_p3 = por %p321_p2, %p320_p1 }
   0x7   :  { %p323_p4 = pnand %p322_p3, %p316_p0 }
   0x9   :  { %326 = shalt.err (!%p323_p4)
}
   0xa   :  { %s351_s13 = smov [#allocation2]  }
   0xb   :  { %18 = dma.vmem_to_smem %s16_s11, 16, %s351_s13, [#allocation4]  }
   0xc   :  { %347 = dma.done.wait [#allocation4], 16  }
   0xd   :  { %348 = vsyncadd [#allocation4], 4294967280 }
   0xe   :  { %24 = sfence }
   0xf   :  { %s26_s14 = sld [smem:[#allocation2]]  ;;  %v60_v0 = vlaneseq  ;;  %v25_v1 = vld [vmem:[%s396_s1] sm:$0x7]  ;;  %v352_v26 = vmov 1983009808   ;;  %vm82_vm0 = vcmask 7168  }
  0x10   :  { %s290_s15 = sld [smem:[#allocation2 + $0x2]]  ;;  %v87_v27 = vunpack.c.l.s4 %v352_v26  ;;  %v353_v28 = vmov 1934713408   ;;  %v354_v42 = vmov 0.0   ;;  %s355_s1 = smov 16   ;;  %vm243_vm1 = vcmask 15360  }
  0x11   :  { %s291_s16 = sld [smem:[#allocation2 + $0x4]]  ;;  %v61_v7 = vshrl.u32 %v60_v0, 7  ;;  %v102_v29 = vunpack.c.l.s4 %v353_v28  ;;  %s356_s21 = smov 2   ;;  %vm245_vm2 = vcmask 31744   ;;  %vm247_vm3 = vcmask 48128  }
  0x12   :  { %s292_s17 = sld [smem:[#allocation2 + $0x1]]  ;;  %v88_v30 = vunpack.c.0.s8 %v87_v27  ;;  %s357_s22 = smov 4   ;;  %vm249_vm4 = vcmask 64512   ;;  %vm251_vm5 = vcmask 80896   ;;  %vm253_vm6 = vcmask 97280  }
  0x13   :  { %s293_s18 = sld [smem:[#allocation2 + $0x3]]  ;;  %v62_v17 = vsub.s32 0, %v61_v7  ;;  %v103_v33 = vunpack.c.0.s8 %v102_v29  ;;  %s358_s23 = smov 18   ;;  %vm255_vm7 = vcmask 113664   ;;  %vm257_vm8 = vcmask 130048  }
  0x14   :  { %s294_s20 = sld [smem:[#allocation2 + $0x5]]  ;;  %v91_v34 = vsub.s32 %v88_v30, %v61_v7  ;;  %s359_s24 = smov 8   ;;  %vm259_vm9 = vcmask 146432   ;;  %vm261_vm10 = vcmask 162816   ;;  %vm263_vm11 = vcmask 179200  }
  0x15   :  { %v27_v2 = vstv %s26_s14  ;;  %v106_v37 = vsub.s32 %v103_v33, %v61_v7  ;;  %s360_s25 = smov 6   ;;  %s361_s26 = smov 20   ;;  %vm265_vm12 = vcmask 195584   ;;  %vm267_vm13 = vcmask 211968  }
  0x16   :  { %v30_v3 = vstv %s290_s15  ;;  %v28_v4 = vmul.f32 %v27_v2, %v25_v1  ;;  %s362_s27 = smov 10   ;;  %s363_s28 = smov 12   ;;  %vm269_vm14 = vcmask 228352   ;;  %vm271_vm15 = vcmask 244736  }
  0x17   :  { %v31_v5 = vmul.f32 %v30_v3, %v25_v1  ;;  %v37_v6 = vstv %s291_s16  ;;  %s364_s29 = smov 22   ;;  %s365_s30 = smov 24  }
  0x18   :  { %v38_v8 = vmul.f32 %v37_v6, %v25_v1  ;;  %v44_v9 = vstv %s292_s17  ;;  %s366_s3 = smov 14   ;;  %s367_s4 = smov 28  }
  0x19   :  { %v33_v10 = vrot.slane %v31_v5, 1  ;;  %v47_v11 = vstv %s293_s18  ;;  %v45_v13 = vmul.f32 %v44_v9, %v25_v1  ;;  %s368_s5 = smov 26   ;;  %s369_s6 = smov 30  }
  0x1a   :  { %v40_v12 = vrot.slane %v38_v8, 2  ;;  %v48_v14 = vmul.f32 %v47_v11, %v25_v1  ;;  %v54_v15 = vstv %s294_s20  ;;  %s370_s7 = smov [#allocation5]  }
  0x1b   :  { %v35_v16 = vadd.f32 %v33_v10, %v28_v4  ;;  %v55_v18 = vmul.f32 %v54_v15, %v25_v1  ;;  %s281_s8 = sshll.u32 %s370_s7, 4  ;;  %s282_s8 = int_to_ptr.vmem [resolvable:$true] %s281_s8 }
  0x1c   :  { %v50_v19 = vrot.slane %v48_v14, 1  ;;  %s327_s9 = scalar_lea.vmem %s282_s8, 16  ;;  %s331_s10 = scalar_lea.vmem %s282_s8, 32 }
  0x1d   :  { %v42_v20 = vadd.f32 %v40_v12, %v35_v16  ;;  %v57_v21 = vrot.slane %v55_v18, 2  ;;  %p328_p5 = scmp.ne.s32.totalorder %s282_s8, %s327_s9  ;;  %p332_p6 = scmp.lt.s32.totalorder %s282_s8, %s282_s8 }
  0x1e   :  { %v52_v22 = vadd.f32 %v50_v19, %v45_v13  ;;  %p333_p7 = scmp.lt.s32.totalorder %s331_s10, %s327_s9 }
  0x1f   :  { %v63_v23 = vrot.slane %v42_v20, %v62_v17 }
  0x20   :  { %v59_v24 = vadd.f32 %v57_v21, %v52_v22  ;;  %p334_p8 = por %p333_p7, %p332_p6 }
  0x21   :  { %69 = vbcast.lane.b32.xlu1 %v63_v23, 264  ;;  %65 = vbcast.lane.b32.xlu0 %v63_v23, 256 }
  0x22   :  { %v74_v25 = vrot.slane %v59_v24, %v62_v17  ;;  %p335_p9 = pnand %p334_p8, %p328_p5 }
  0x25   :  { %80 = vbcast.lane.b32.xlu1 %v74_v25, 264  ;;  %76 = vbcast.lane.b32.xlu0 %v74_v25, 256 }
  0x93   :  { %v70_v31 = vpop.permute.xlu1 %69  ;;  %v66_v32 = vpop.permute.xlu0 %65 }
  0x97   :  { %v81_v35 = vpop.permute.xlu1 %80  ;;  %v77_v36 = vpop.permute.xlu0 %76 }
  0x98   :  { %v84_v38 = vsel %vm82_vm0, %v70_v31, %v81_v35  ;;  %v83_v39 = vsel %vm82_vm0, %v66_v32, %v77_v36  ;;  %vm273_vm0 = vcmask 253952  }
  0x99   :  { %v141_v40 = vrot.slane %v84_v38, %v91_v34  ;;  %v92_v41 = vrot.slane %v83_v39, %v91_v34  ;;  %v85_v43 = vcombine.high %v83_v39, %v354_v42  ;;  %v134_v54 = vcombine.high %v84_v38, %v354_v42 }
  0x9b   :  { %v100_v44 = vcombine.high %v92_v41, %v354_v42  ;;  %v107_v45 = vrot.slane %v92_v41, %v106_v37  ;;  %v156_v46 = vrot.slane %v141_v40, %v106_v37  ;;  %v99_v48 = vrot.slane %v85_v43, %v91_v34 }
  0x9c   :  { %v149_v51 = vcombine.high %v141_v40, %v354_v42  ;;  %v148_v58 = vrot.slane %v134_v54, %v91_v34 }
  0x9d   :  { %212 = vrot.lane.b32.xlu1 %v156_v46, %s355_s1  ;;  %v130_v47 = vcombine.high %v107_v45, %v354_v42  ;;  %v114_v49 = vrot.slane %v100_v44, %v106_v37  ;;  %v179_v50 = vcombine.high %v156_v46, %v354_v42  ;;  %v122_v52 = vrot.slane %v99_v48, %v106_v37 }
  0x9e   :  { %v163_v55 = vrot.slane %v149_v51, %v106_v37  ;;  %v115_v56 = vcombine.high %v99_v48, %v354_v42  ;;  %v171_v61 = vrot.slane %v148_v58, %v106_v37  ;;  %v164_v62 = vcombine.high %v148_v58, %v354_v42 }
  0x9f   :  { %184 = vrot.lane.b32.xlu0 %v130_v47, %s356_s21  ;;  %v131_v53 = vcombine.high %v114_v49, %v354_v42  ;;  %v132_v57 = vcombine.high %v122_v52, %v354_v42 }
  0xa0   :  { %v129_v59 = vrot.slane %v115_v56, %v106_v37  ;;  %v180_v60 = vcombine.high %v163_v55, %v354_v42  ;;  %v178_v0 = vrot.slane %v164_v62, %v106_v37  ;;  %v181_v1 = vcombine.high %v171_v61, %v354_v42 }
  0xa1   :  { %188 = vrot.lane.b32.xlu1 %v114_v49, %s357_s22 }
  0xa2   :  { %v133_v63 = vcombine.high %v129_v59, %v354_v42  ;;  %v182_v2 = vcombine.high %v178_v0, %v354_v42 }
  0xa3   :  { %216 = vrot.lane.b32.xlu0 %v179_v50, %s358_s23 }
  0xa5   :  { %196 = vrot.lane.b32.xlu1 %v122_v52, %s359_s24 }
  0xa7   :  { %192 = vrot.lane.b32.xlu0 %v131_v53, %s360_s25 }
  0xa9   :  { %220 = vrot.lane.b32.xlu1 %v163_v55, %s361_s26 }
  0xab   :  { %200 = vrot.lane.b32.xlu0 %v132_v57, %s362_s27 }
  0xad   :  { %204 = vrot.lane.b32.xlu1 %v129_v59, %s363_s28 }
  0xaf   :  { %224 = vrot.lane.b32.xlu0 %v180_v60, %s364_s29 }
  0xb1   :  { %228 = vrot.lane.b32.xlu1 %v171_v61, %s365_s30 }
  0xb3   :  { %208 = vrot.lane.b32.xlu0 %v133_v63, %s366_s3 }
  0xb5   :  { %236 = vrot.lane.b32.xlu1 %v178_v0, %s367_s4 }
  0xb7   :  { %232 = vrot.lane.b32.xlu0 %v181_v1, %s368_s5 }
  0xbb   :  { %240 = vrot.lane.b32.xlu0 %v182_v2, %s369_s6 }
 0x10f   :  { %v213_v3 = vpop.permute.xlu1 %212 }
 0x111   :  { %v185_v4 = vpop.permute.xlu0 %184 }
 0x112   :  { %v244_v9 = vsel %vm243_vm1, %v107_v45, %v185_v4 }
 0x113   :  { %v189_v5 = vpop.permute.xlu1 %188 }
 0x114   :  { %v246_v11 = vsel %vm245_vm2, %v244_v9, %v189_v5 }
 0x115   :  { %v217_v6 = vpop.permute.xlu0 %216 }
 0x117   :  { %v197_v7 = vpop.permute.xlu1 %196 }
 0x119   :  { %v193_v8 = vpop.permute.xlu0 %192 }
 0x11a   :  { %v248_v13 = vsel %vm247_vm3, %v246_v11, %v193_v8 }
 0x11b   :  { %v221_v10 = vpop.permute.xlu1 %220  ;;  %v250_v15 = vsel %vm249_vm4, %v248_v13, %v197_v7 }
 0x11d   :  { %v201_v12 = vpop.permute.xlu0 %200 }
 0x11e   :  { %v252_v17 = vsel %vm251_vm5, %v250_v15, %v201_v12 }
 0x11f   :  { %v205_v14 = vpop.permute.xlu1 %204 }
 0x120   :  { %v254_v18 = vsel %vm253_vm6, %v252_v17, %v205_v14 }
 0x121   :  { %v225_v16 = vpop.permute.xlu0 %224 }
 0x123   :  { %v229_v20 = vpop.permute.xlu1 %228 }
 0x125   :  { %v209_v19 = vpop.permute.xlu0 %208 }
 0x126   :  { %v256_v21 = vsel %vm255_vm7, %v254_v18, %v209_v19 }
 0x127   :  { %v258_v22 = vsel %vm257_vm8, %v256_v21, %v213_v3  ;;  %v237_v28 = vpop.permute.xlu1 %236 }
 0x128   :  { %v260_v23 = vsel %vm259_vm9, %v258_v22, %v217_v6 }
 0x129   :  { %v262_v24 = vsel %vm261_vm10, %v260_v23, %v221_v10  ;;  %v233_v25 = vpop.permute.xlu0 %232 }
 0x12a   :  { %v264_v26 = vsel %vm263_vm11, %v262_v24, %v225_v16 }
 0x12b   :  { %v266_v27 = vsel %vm265_vm12, %v264_v26, %v229_v20 }
 0x12c   :  { %v268_v29 = vsel %vm267_vm13, %v266_v27, %v233_v25 }
 0x12d   :  { %v241_v30 = vpop.permute.xlu0 %240  ;;  %v270_v31 = vsel %vm269_vm14, %v268_v29, %v237_v28 }
 0x12e   :  { %v272_v32 = vsel %vm271_vm15, %v270_v31, %v241_v30 }
 0x12f   :  { %274 = vst.msk [vmem:[#allocation5] sm:$0x1] %vm273_vm0, %v272_v32 }
 0x130   :  { %338 = shalt.err (!%p335_p9)
}
 0x131   :  { %284 = dma.vmem_to_hbm [thread:$0]  %s282_s8, 16, %s397_s2, [#allocation3]  }
 0x132   :  { %349 = dma.done.wait [#allocation3], 16  }
 0x133   :  { %350 = vsyncadd [#allocation3], 4294967280 }
 0x134   :  { %288 = vsyncpa [#allocation3], 1 }
 0x135   :  { %289 = vsyncpa [#allocation4], 1 }

// kernel: tpu_custom_call.1
= control target key start
LH: loop header
LB: loop body
LE: loop exit
PB: predicated region body
PF: predicated region fallthrough
CT: control target
= control target key end

     0   :  { %7 = vsyncpa [#allocation4], 0  ;;  %s646_s0 = inlined_call_operand.vmem [shape: f32[6], index: 0, kind: input, shape index: {}]   ;;  %s647_s1 = inlined_call_operand.vmem [shape: f32[2,3,16], index: 1, kind: input, shape index: {}]   ;;  %s648_s2 = inlined_call_operand.hbm [shape: f32[2,2,16], index: 2, kind: output, shape index: {}]  }
   0x1   :  { %8 = vsyncpa [#allocation3], 0 }
   0x2   :  { %10 = vsyncpa [#allocation3 + $0x1], 0  ;;  %s516_s9 = smov 0   ;;  %s518_s10 = smov 0  }
   0x3   :  { %s520_s11 = smov 0   ;;  %s522_s12 = smov 0  }
   0x4   :  { %s524_s13 = smov 0   ;;  %s526_s14 = smov 0  }
   0x5 LB: > { %s318_s15 = sadd.s32 4294967295, %s497_s14   ;;  %s319_s16 = sadd.s32 4294967294, %s497_s14   ;;  %s497_s14 = sphi %s526_s14, %s16_s14   ;;  %s493_s13 = sphi %s524_s13, %s657_s13   ;;  %s489_s12 = sphi %s522_s12, %s656_s12   ;;  %s485_s11 = sphi %s520_s11, %s655_s11   ;;  %s481_s10 = sphi %s518_s10, %s654_s10   ;;  %s477_s9 = sphi %s516_s9, %s653_s9  }
   0x6   : > { %s28_s17 = sadd.s32 1, %s493_s13  ;;  %s86_s18 = sadd.s32 1, %s485_s11 }
   0x7   : > { %p30_p0 = scmp.ge.s32.totalorder %s28_s17, 2  ;;  %p96_p1 = scmp.ne.s32.totalorder %s485_s11, %s481_s10 }
   0x8   : > { %p97_p2 = scmp.eq.s32.totalorder %s318_s15, 1  ;;  %p102_p3 = scmp.ne.s32.totalorder %s481_s10, %s477_s9 }
   0x9   : > { %s659_s17 = smov (%p30_p0, %s28_s17), 0  ;;  %p103_p5 = scmp.eq.s32.totalorder %s319_s16, 1 }
   0xa   : > { %p556_p4 = por %p97_p2, %p96_p1  ;;  %s81_s20 = ssub.s32 %s493_s13, %s659_s17 }
   0xb   : > { %p320_p6 = scmp.ge.s32.totalorder %s497_s14, 1  ;;  %p84_p7 = scmp.eq.s32.totalorder %s81_s20, 0 }
   0xc   : > { %p563_p8 = por %p103_p5, %p102_p3  ;;  %p110_p9 = scmp.lt.s32.totalorder %s497_s14, 3 }
   0xd   : > { %s569_s22 = scalar_select %p84_p7, %s485_s11, %s86_s18  }
   0xe   : > { %p571_p10 = pnand %p320_p6, %p110_p9  ;;  %p575_p11 = scmp.eq.s32.totalorder %s318_s15, 0 }
   0xf   : > { %s123_s27 = sshll.u32 %s646_s0, 4  ;;  %s124_s27 = int_to_ptr.vmem [resolvable:$true] %s123_s27 }
  0x10   : > { %p342_p12 = pneg %p571_p10  ;;  %s402_s28 = scalar_lea.vmem %s124_s27, 16 }
  0x11   : > { %p403_p0 = scmp.ne.s32.totalorder %s124_s27, %s402_s28  ;;  %p410_p5 = scmp.lt.s32.totalorder %s124_s27, %s124_s27 }
  0x12   : > { %p343_p13 = pnand %p575_p11, %p342_p12  ;;  %p411_p6 = scmp.lt.s32.totalorder %s402_s28, %s402_s28 }
  0x14   : > { %p404_p1 = pneg %p343_p13  ;;  %p412_p7 = por %p411_p6, %p410_p5 }
  0x16   : > { %p405_p2 = pnand %p404_p1, %p403_p0 }
  0x18   : > { %p406_p3 = pneg %p405_p2 }
  0x1a   : > { %p413_p9 = pnand %p412_p7, %p406_p3 }
  0x1c   : > { %416 = shalt.err (!%p413_p9)
}
  0x1d   : > { %s499_s29 = smov [#allocation2]   ;;  %146 = sbr.rel (%p571_p10) target bundleno = 73 (0x49), region = 28 }
  0x1e   : > { %345 = dma.vmem_to_smem (!%p343_p13), %s124_s27, 16, %s499_s29, [#allocation4]  }
  0x22   : > { %468 = dma.done.wait (%p575_p11), [#allocation4], 16  }
  0x23   : > { %470 = vsyncadd (%p575_p11), [#allocation4], 4294967280 }
  0x24   : > { %152 = sfence }
  0x25   : > { %p171_p12 = scmp.lt.s32.totalorder %s489_s12, 1  ;;  %s179_s30 = sld [smem:[#allocation2]]  ;;  %vm216_vm0 = vcmask 1040384   ;;  %vm218_vm1 = vcmask 123904  }
  0x26   : > { %s327_s3 = sld [smem:[#allocation2 + $0x2]]  ;;  %s168_s23 = sand.u32 1, %s481_s10  }
  0x27   : > { %s172_s4 = scalar_select %p171_p12, %s489_s12, 1 }
  0x28   : > { %s328_s5 = sld [smem:[#allocation2 + $0x4]]  ;;  %s325_s24 = sshll.u32 %s168_s23, 1 }
  0x29   : > { %s326_s6 = sshll.u32 %s172_s4, 2  ;;  %s329_s7 = sld [smem:[#allocation2 + $0x1]] }
  0x2a   : > { %s177_s16 = scalar_lea.vmem %s647_s1, %s326_s6  ;;  %s330_s18 = sld [smem:[#allocation2 + $0x3]] }
  0x2b   : > { %s331_s20 = sld [smem:[#allocation2 + $0x5]]  ;;  %v178_v0 = vld [vmem:[%s177_s16] sm:$0x7]  ;;  %v180_v1 = vstv %s179_s30  ;;  %s170_s25 = scalar_lea.vmem [#allocation5], %s325_s24 }
  0x2c   : > { %v183_v2 = vstv %s327_s3  ;;  %v181_v5 = vmul.f32 %v180_v1, %v178_v0  ;;  %s235_s26 = sshll.u32 %s170_s25, 4  ;;  %s333_s27 = sshll.u32 %s489_s12, 5  ;;  %s601_s26 = int_to_ptr.vmem [resolvable:$true] %s235_s26 }
  0x2d   : > { %v184_v3 = vmul.f32 %v183_v2, %v178_v0  ;;  %s233_s30 = scalar_lea.hbm %s648_s2, %s333_s27  ;;  %s221_s3 = scalar_lea.sflag [#allocation3], %s168_s23 }
  0x2e   : > { %v190_v4 = vstv %s328_s5  ;;  %s417_s4 = scalar_lea.vmem %s601_s26, 32  ;;  %s500_s12 = smov [#allocation5]  }
  0x2f   : > { %v186_v6 = vrot.slane %v184_v3, 1  ;;  %v191_v7 = vmul.f32 %v190_v4, %v178_v0  ;;  %v197_v8 = vstv %s329_s7  ;;  %p418_p10 = scmp.ne.s32.totalorder %s601_s26, %s417_s4  ;;  %s421_s5 = sshll.u32 %s500_s12, 4  ;;  %s422_s5 = int_to_ptr.vmem [resolvable:$false] %s421_s5 }
  0x30   : > { %v200_v9 = vstv %s330_s18  ;;  %v198_v10 = vmul.f32 %v197_v8, %v178_v0  ;;  %s423_s6 = scalar_lea.vmem %s422_s5, 64  ;;  %p424_p0 = scmp.lt.s32.totalorder %s601_s26, %s422_s5 }
  0x31   : > { %v201_v11 = vmul.f32 %v200_v9, %v178_v0  ;;  %v207_v12 = vstv %s331_s20  ;;  %v188_v14 = vadd.f32 %v186_v6, %v181_v5  ;;  %v193_v15 = vrot.slane %v191_v7, 2  ;;  %p419_p11 = pnand %p418_p10, %p556_p4  ;;  %p425_p1 = scmp.lt.s32.totalorder %s423_s6, %s417_s4 }
  0x32   : > { %v208_v13 = vmul.f32 %v207_v12, %v178_v0 }
  0x33   : > { %v203_v16 = vrot.slane %v201_v11, 1  ;;  %v195_v19 = vadd.f32 %v193_v15, %v188_v14  ;;  %p420_p13 = pneg %p419_p11  ;;  %p426_p2 = por %p425_p1, %p424_p0 }
  0x34   : > { %v210_v17 = vrot.slane %v208_v13, 2 }
  0x35   : > { %v205_v18 = vadd.f32 %v203_v16, %v198_v10  ;;  %p427_p3 = pnand %p426_p2, %p420_p13 }
  0x37   : > { %v212_v20 = vadd.f32 %v210_v17, %v205_v18 }
  0x39   : > { %v214_v21 = vrot.slane %v212_v20, 7 }
  0x3b   : > { %v217_v22 = vsel %vm216_vm0, %v195_v19, %v214_v21 }
  0x3c   : > { %219 = vst.msk [vmem:[%s170_s25] sm:$0x3] %vm218_vm1, %v217_v22 }
  0x3d   : > { %430 = shalt.err (!%p427_p3)
}
  0x3e   : > { %s431_s7 = scalar_lea.hbm %s233_s30, 32  ;;  %s435_s16 = scalar_lea.hbm %s648_s2, 64 }
  0x3f   : > { %p432_p5 = scmp.ne.s32.totalorder %s233_s30, %s431_s7  ;;  %p436_p9 = scmp.lt.s32.totalorder %s233_s30, %s648_s2 }
  0x40   : > { %p437_p12 = scmp.lt.s32.totalorder %s435_s16, %s431_s7 }
  0x41   : > { %p433_p6 = pnand %p432_p5, %p556_p4 }
  0x42   : > { %p438_p10 = por %p437_p12, %p436_p9 }
  0x43   : > { %p434_p7 = pneg %p433_p6 }
  0x45   : > { %p439_p11 = pnand %p438_p10, %p434_p7 }
  0x47   : > { %442 = shalt.err (!%p439_p11)
}
  0x48   : > { %340 = dma.vmem_to_hbm [thread:$0]  (%p556_p4), %s601_s26, 32, %s233_s30, %s221_s3  }
  0x49 PF: > { %p352_p13 = scmp.ge.s32.totalorder %s497_s14, 2  ;;  %s247_s23 = sand.u32 1, %s477_s9  }
  0x4a   : > { %s248_s24 = scalar_lea.sflag [#allocation3], %s247_s23 }
  0x4b   : > { %p347_p0 = pnand %p352_p13, %p563_p8 }
  0x4d   : > { %p348_p1 = pneg %p347_p0 }
  0x4f   : > { %472 = dma.done.wait (%p348_p1), %s248_s24, 32  }
  0x50   : > { %474 = vsyncadd (%p348_p1), %s248_s24, 4294967264  ;;  %s16_s14 = sadd.s32 1, %s497_s14   ;;  %s653_s9 = smov %s481_s10 }
  0x51   : > { %p13_p2 = scmp.ge.s32.totalorder %s16_s14, 4   ;;  %s654_s10 = smov %s485_s11 }
  0x52   : > { %s655_s11 = smov %s569_s22  ;;  %s656_s12 = smov %s493_s13 }
  0x53   : > { %s657_s13 = smov %s659_s17  ;;  %15 = sbr.rel (!%p13_p2) target bundleno = 5 (0x5), region = 68 }
  0x58   :  { %253 = vsyncpa [#allocation3], 1 }
  0x59   :  { %255 = vsyncpa [#allocation3 + $0x1], 1 }
  0x5a   :  { %256 = vsyncpa [#allocation4], 1 }
  0x5b   :  { %258 = vsyncpa [#allocation4 + $0x1], 1 }

</bundles_post_ra>
